<compile_context>
chip_gen: v7x
topology: tpu7x:2x2x1
jax: 0.10.0
libtpu: 0.0.40
codegen_flags: <defaults>
</compile_context>

<pallas_src>
import functools

import jax
import jax.numpy as jnp
from jax.experimental import pallas as pl
from jax.experimental.pallas import tpu as pltpu


def _layer_dims(input_features, output_features, scale_factor):
    """Reproduce the layer-size construction loop of Network.__init__."""
    dims = []
    in_features = input_features
    while in_features > output_features * scale_factor:
        out_features = max(int(in_features / scale_factor),
                           output_features * scale_factor)
        dims.append((in_features, out_features))
        in_features = out_features
    dims.append((in_features, output_features))
    return dims


def _round_up(x, m):
    return ((x + m - 1) // m) * m


def _mlp_kernel(n_layers, *refs):
    # refs = (x_ref, w0, b0, w1, b1, ..., w_{L-1}, b_{L-1}, out_ref)
    x_ref = refs[0]
    param_refs = refs[1:-1]
    out_ref = refs[-1]

    h = x_ref[...]                                   # (TILE_B, F_in) f32
    # Python-unrolled layer chain: full scheduler visibility so MXU pushes of
    # layer i+1 interleave with the VPU epilogue of layer i.
    for i in range(n_layers):
        w = param_refs[2 * i][...]                   # bf16 (fan_in, fan_out)
        b = param_refs[2 * i + 1][...]               # f32  (1, fan_out)
        h = jnp.dot(h.astype(jnp.bfloat16), w,
                    preferred_element_type=jnp.float32) + b
        if i < n_layers - 1:                         # ReLU except after last
            h = jnp.maximum(h, 0.0)
    # Sigmoid: exp + approximate reciprocal both land on the EUP slot.
    out_ref[...] = pl.reciprocal(1.0 + jnp.exp(-h), approx=True).astype(
        out_ref.dtype)


def _choose_tile_b(batch, input_features, out_pad, max_hidden, param_bytes,
                   tile_b_max=4096, vmem_budget=24 << 20):
    """Pick a batch tile from an explicit VMEM budget (not a fixed cap)."""
    # Per-row resident bytes: double-buffered x (f32) + double-buffered bf16
    # output tile + a few live intermediate activation copies (f32).
    per_row = 2 * input_features * 4 + 2 * out_pad * 2 + 3 * max_hidden * 4
    avail = max(vmem_budget - param_bytes, per_row * 16)
    tile = min(tile_b_max, avail // per_row)
    # Multiple of 16 keeps bf16 output blocks sublane-aligned.
    tile = max(16, (tile // 16) * 16)
    tile = min(tile, _round_up(batch, 16))
    # Give the "parallel" batch axis >= 2 grid steps when possible so v7x can
    # shard across its two TensorCores (harmless on v5e/v6e).
    if batch >= 32:
        tile = min(tile, _round_up(pl.cdiv(batch, 2), 16))
    return int(tile)


def make_network(input_features, output_features, scale_factor, key,
                 tile_b_max=4096):
    """Build deterministic params and return (reference_params, forward_fn)."""
    dims = _layer_dims(input_features, output_features, scale_factor)
    n_layers = len(dims)
    out_pad = _round_up(output_features, 128)        # lane-dense output width
    max_hidden = max(max(fo for _, fo in dims), out_pad)

    params_f32 = []        # unpadded f32 params (for the reference path)
    kernel_params = []     # bf16 weights (last layer lane-padded), f32 biases
    for li, (fan_in, fan_out) in enumerate(dims):
        key, kw, kb = jax.random.split(key, 3)
        bound = 1.0 / float(fan_in) ** 0.5
        # Stored as (in, out): pre-transposed PyTorch Linear weight.
        w = jax.random.uniform(kw, (fan_in, fan_out), jnp.float32,
                               minval=-bound, maxval=bound)
        b = jax.random.uniform(kb, (1, fan_out), jnp.float32,
                               minval=-bound, maxval=bound)
        params_f32 += [w, b]
        if li == n_layers - 1 and fan_out != out_pad:
            # Zero-pad the last layer to a full 128-lane output slab; padded
            # columns produce sigmoid(0)=0.5 and are sliced off in the wrapper.
            wk = jnp.zeros((fan_in, out_pad), jnp.float32).at[:, :fan_out].set(w)
            bk = jnp.zeros((1, out_pad), jnp.float32).at[:, :fan_out].set(b)
        else:
            wk, bk = w, b
        kernel_params += [wk.astype(jnp.bfloat16), bk]

    param_bytes = int(sum(p.size * p.dtype.itemsize for p in kernel_params))
    # v7x has only 64 MiB VMEM per TensorCore; keep all-resident weights well
    # under half of that.
    if param_bytes > (24 << 20):
        # TODO(synk): stream weights per layer (or tile the first layer over
        # fan_out) for input_features large enough that resident bf16 weights
        # exceed v7x's VMEM budget.
        raise NotImplementedError(
            "weights exceed the VMEM-resident budget; per-layer streaming "
            "is not implemented")

    kernel = functools.partial(_mlp_kernel, n_layers)
    total_macs_per_row = sum(fi * fo for fi, fo in dims)

    def forward(x):
        batch = x.shape[0]
        if x.dtype != jnp.float32:
            x = x.astype(jnp.float32)

        tile_b = _choose_tile_b(batch, input_features, out_pad, max_hidden,
                                param_bytes, tile_b_max=tile_b_max)
        # No jnp.pad of x: partial last block (if any) is masked by Pallas;
        # garbage OOB rows are row-independent and never stored.
        n_steps = pl.cdiv(batch, tile_b)

        in_specs = [pl.BlockSpec((tile_b, input_features), lambda i: (i, 0))]
        for p in kernel_params:
            # Full-array blocks, constant index_map, single-buffered: fetched
            # once and VMEM-resident across all grid steps.
            in_specs.append(pl.BlockSpec(p.shape, lambda i: (0, 0),
                                         pipeline_mode=pl.Buffered(1)))
        out_spec = pl.BlockSpec((tile_b, out_pad), lambda i: (i, 0))

        # Explicit scoped-VMEM limit sized to resident params + tiles.
        per_row = (2 * input_features * 4 + 2 * out_pad * 2
                   + 3 * max_hidden * 4)
        need = param_bytes + tile_b * per_row + (4 << 20)
        vmem_limit = int(min(56 << 20, max(need, 16 << 20)))

        cost = pl.CostEstimate(
            flops=2 * batch * total_macs_per_row,
            transcendentals=2 * batch * out_pad,
            bytes_accessed=(batch * input_features * 4
                            + batch * out_pad * 2 + param_bytes),
        )

        out = pl.pallas_call(
            kernel,
            out_shape=jax.ShapeDtypeStruct((batch, out_pad), jnp.bfloat16),
            grid=(n_steps,),
            in_specs=in_specs,
            out_specs=out_spec,
            compiler_params=pltpu.CompilerParams(
                dimension_semantics=("parallel",),
                vmem_limit_bytes=vmem_limit),
            cost_estimate=cost,
        )(x, *kernel_params)
        return out[:, :output_features].astype(jnp.float32)

    return params_f32, forward


def reference_forward(x, params, n_layers):
    """Plain-JAX f32 reference for sanity checking."""
    h = x
    for i in range(n_layers):
        w = params[2 * i]
        b = params[2 * i + 1]
        h = h @ w + b
        if i < n_layers - 1:
            h = jnp.maximum(h, 0.0)
    return jax.nn.sigmoid(h)


if __name__ == "__main__":
    # Small shapes consistent with the module: shrinking MLP 64->32->16->8->4.
    input_features = 64
    output_features = 4
    scale_factor = 2
    batch = 64

    key = jax.random.PRNGKey(0)
    key, pkey, xkey = jax.random.split(key, 3)

    params, forward = make_network(input_features, output_features,
                                   scale_factor, pkey)
    x = jax.random.normal(xkey, (batch, input_features), jnp.float32)

    out = jax.block_until_ready(forward(x))

    n_layers = len(params) // 2
    ref = reference_forward(x, params, n_layers)
    assert out.shape == (batch, output_features)
    # bf16 matmul inputs + bf16 output store + approx reciprocal => relaxed
    # tolerance vs the f32 reference.
    assert jnp.allclose(out, ref, atol=2e-2, rtol=2e-2), "mismatch vs reference"

    print("KERNEL_OK")
</pallas_src>

<mosaic_0001>
module attributes {stable_mosaic.version = 11 : i64} {
  func.func @_mlp_kernel(%arg0: i32, %arg1: memref<32x64xf32, #tpu.memory_space<vmem>>, %arg2: memref<64x32xbf16, #tpu.memory_space<vmem>>, %arg3: memref<1x32xf32, #tpu.memory_space<vmem>>, %arg4: memref<32x16xbf16, #tpu.memory_space<vmem>>, %arg5: memref<1x16xf32, #tpu.memory_space<vmem>>, %arg6: memref<16x8xbf16, #tpu.memory_space<vmem>>, %arg7: memref<1x8xf32, #tpu.memory_space<vmem>>, %arg8: memref<8x128xbf16, #tpu.memory_space<vmem>>, %arg9: memref<1x128xf32, #tpu.memory_space<vmem>>, %arg10: memref<32x128xbf16, #tpu.memory_space<vmem>>) attributes {dimension_semantics = [#tpu.dimension_semantics<parallel>], iteration_bounds = array<i64: 2>, scalar_prefetch = 0 : i64, scratch_operands = 0 : i64, tpu.core_type = #tpu.core_type<tc>, window_params = [{transform_indices = @transform_0, window_bounds = array<i64: 32, 64>}, {pipeline_mode = #tpu.pipeline_mode<synchronous>, transform_indices = @transform_1, window_bounds = array<i64: 64, 32>}, {pipeline_mode = #tpu.pipeline_mode<synchronous>, transform_indices = @transform_2, window_bounds = array<i64: 1, 32>}, {pipeline_mode = #tpu.pipeline_mode<synchronous>, transform_indices = @transform_3, window_bounds = array<i64: 32, 16>}, {pipeline_mode = #tpu.pipeline_mode<synchronous>, transform_indices = @transform_4, window_bounds = array<i64: 1, 16>}, {pipeline_mode = #tpu.pipeline_mode<synchronous>, transform_indices = @transform_5, window_bounds = array<i64: 16, 8>}, {pipeline_mode = #tpu.pipeline_mode<synchronous>, transform_indices = @transform_6, window_bounds = array<i64: 1, 8>}, {pipeline_mode = #tpu.pipeline_mode<synchronous>, transform_indices = @transform_7, window_bounds = array<i64: 8, 128>}, {pipeline_mode = #tpu.pipeline_mode<synchronous>, transform_indices = @transform_8, window_bounds = array<i64: 1, 128>}, {transform_indices = @transform_9, window_bounds = array<i64: 32, 128>}]} {
    %c0 = arith.constant 0 : index
    %c0_0 = arith.constant 0 : index
    %0 = vector.load %arg1[%c0, %c0_0] : memref<32x64xf32, #tpu.memory_space<vmem>>, vector<32x64xf32>
    %c0_1 = arith.constant 0 : index
    %c0_2 = arith.constant 0 : index
    %1 = vector.load %arg2[%c0_1, %c0_2] : memref<64x32xbf16, #tpu.memory_space<vmem>>, vector<64x32xbf16>
    %c0_3 = arith.constant 0 : index
    %c0_4 = arith.constant 0 : index
    %2 = vector.load %arg3[%c0_3, %c0_4] : memref<1x32xf32, #tpu.memory_space<vmem>>, vector<1x32xf32>
    %3 = arith.truncf %0 : vector<32x64xf32> to vector<32x64xbf16>
    %cst = arith.constant dense<0.000000e+00> : vector<32x32xf32>
    %4 = tpu.matmul %3, %1, %cst {dimension_numbers = #tpu.dot_dimension_numbers<[1], [0], [0], [1], [0, 0, 1, 1], [], []>} : vector<32x64xbf16>, vector<64x32xbf16>, vector<32x32xf32> -> vector<32x32xf32>
    %5 = vector.broadcast %2 : vector<1x32xf32> to vector<32x32xf32>
    %6 = arith.addf %4, %5 : vector<32x32xf32>
    %cst_5 = arith.constant 0.000000e+00 : f32
    %7 = vector.broadcast %cst_5 : f32 to vector<32x32xf32>
    %8 = arith.maximumf %6, %7 : vector<32x32xf32>
    %c0_6 = arith.constant 0 : index
    %c0_7 = arith.constant 0 : index
    %9 = vector.load %arg4[%c0_6, %c0_7] : memref<32x16xbf16, #tpu.memory_space<vmem>>, vector<32x16xbf16>
    %c0_8 = arith.constant 0 : index
    %c0_9 = arith.constant 0 : index
    %10 = vector.load %arg5[%c0_8, %c0_9] : memref<1x16xf32, #tpu.memory_space<vmem>>, vector<1x16xf32>
    %11 = arith.truncf %8 : vector<32x32xf32> to vector<32x32xbf16>
    %cst_10 = arith.constant dense<0.000000e+00> : vector<32x16xf32>
    %12 = tpu.matmul %11, %9, %cst_10 {dimension_numbers = #tpu.dot_dimension_numbers<[1], [0], [0], [1], [0, 0, 1, 1], [], []>} : vector<32x32xbf16>, vector<32x16xbf16>, vector<32x16xf32> -> vector<32x16xf32>
    %13 = vector.broadcast %10 : vector<1x16xf32> to vector<32x16xf32>
    %14 = arith.addf %12, %13 : vector<32x16xf32>
    %cst_11 = arith.constant 0.000000e+00 : f32
    %15 = vector.broadcast %cst_11 : f32 to vector<32x16xf32>
    %16 = arith.maximumf %14, %15 : vector<32x16xf32>
    %c0_12 = arith.constant 0 : index
    %c0_13 = arith.constant 0 : index
    %17 = vector.load %arg6[%c0_12, %c0_13] : memref<16x8xbf16, #tpu.memory_space<vmem>>, vector<16x8xbf16>
    %c0_14 = arith.constant 0 : index
    %c0_15 = arith.constant 0 : index
    %18 = vector.load %arg7[%c0_14, %c0_15] : memref<1x8xf32, #tpu.memory_space<vmem>>, vector<1x8xf32>
    %19 = arith.truncf %16 : vector<32x16xf32> to vector<32x16xbf16>
    %cst_16 = arith.constant dense<0.000000e+00> : vector<32x8xf32>
    %20 = tpu.matmul %19, %17, %cst_16 {dimension_numbers = #tpu.dot_dimension_numbers<[1], [0], [0], [1], [0, 0, 1, 1], [], []>} : vector<32x16xbf16>, vector<16x8xbf16>, vector<32x8xf32> -> vector<32x8xf32>
    %21 = vector.broadcast %18 : vector<1x8xf32> to vector<32x8xf32>
    %22 = arith.addf %20, %21 : vector<32x8xf32>
    %cst_17 = arith.constant 0.000000e+00 : f32
    %23 = vector.broadcast %cst_17 : f32 to vector<32x8xf32>
    %24 = arith.maximumf %22, %23 : vector<32x8xf32>
    %c0_18 = arith.constant 0 : index
    %c0_19 = arith.constant 0 : index
    %25 = vector.load %arg8[%c0_18, %c0_19] : memref<8x128xbf16, #tpu.memory_space<vmem>>, vector<8x128xbf16>
    %c0_20 = arith.constant 0 : index
    %c0_21 = arith.constant 0 : index
    %26 = vector.load %arg9[%c0_20, %c0_21] : memref<1x128xf32, #tpu.memory_space<vmem>>, vector<1x128xf32>
    %27 = arith.truncf %24 : vector<32x8xf32> to vector<32x8xbf16>
    %cst_22 = arith.constant dense<0.000000e+00> : vector<32x128xf32>
    %28 = tpu.matmul %27, %25, %cst_22 {dimension_numbers = #tpu.dot_dimension_numbers<[1], [0], [0], [1], [0, 0, 1, 1], [], []>} : vector<32x8xbf16>, vector<8x128xbf16>, vector<32x128xf32> -> vector<32x128xf32>
    %29 = vector.broadcast %26 : vector<1x128xf32> to vector<32x128xf32>
    %30 = arith.addf %28, %29 : vector<32x128xf32>
    %cst_23 = arith.constant 0.000000e+00 : f32
    %31 = vector.broadcast %cst_23 : f32 to vector<32x128xf32>
    %32 = arith.subf %31, %30 : vector<32x128xf32>
    %33 = math.exp %32 : vector<32x128xf32>
    %cst_24 = arith.constant 1.000000e+00 : f32
    %34 = vector.broadcast %cst_24 : f32 to vector<32x128xf32>
    %35 = arith.addf %34, %33 : vector<32x128xf32>
    %36 = tpu.reciprocal %35 {approx = true} : vector<32x128xf32> -> vector<32x128xf32>
    %37 = arith.truncf %36 : vector<32x128xf32> to vector<32x128xbf16>
    %c0_25 = arith.constant 0 : index
    %c0_26 = arith.constant 0 : index
    %38 = vector.load %arg10[%c0_25, %c0_26] : memref<32x128xbf16, #tpu.memory_space<vmem>>, vector<32x128xbf16>
    tpu.vector_store %arg10[%c0_25, %c0_26], %37 {strides = array<i32>} : memref<32x128xbf16, #tpu.memory_space<vmem>>, vector<32x128xbf16>,
    return
  }
  func.func @transform_0(%arg0: i32) -> (i32, i32) {
    %c0_i32 = arith.constant 0 : i32
    %c0_i32_0 = arith.constant 0 : i32
    return %arg0, %c0_i32 : i32, i32
  }
  func.func @transform_1(%arg0: i32) -> (i32, i32) {
    %c0_i32 = arith.constant 0 : i32
    %c0_i32_0 = arith.constant 0 : i32
    %c0_i32_1 = arith.constant 0 : i32
    return %c0_i32, %c0_i32_0 : i32, i32
  }
  func.func @transform_2(%arg0: i32) -> (i32, i32) {
    %c0_i32 = arith.constant 0 : i32
    %c0_i32_0 = arith.constant 0 : i32
    %c0_i32_1 = arith.constant 0 : i32
    return %c0_i32, %c0_i32_0 : i32, i32
  }
  func.func @transform_3(%arg0: i32) -> (i32, i32) {
    %c0_i32 = arith.constant 0 : i32
    %c0_i32_0 = arith.constant 0 : i32
    %c0_i32_1 = arith.constant 0 : i32
    return %c0_i32, %c0_i32_0 : i32, i32
  }
  func.func @transform_4(%arg0: i32) -> (i32, i32) {
    %c0_i32 = arith.constant 0 : i32
    %c0_i32_0 = arith.constant 0 : i32
    %c0_i32_1 = arith.constant 0 : i32
    return %c0_i32, %c0_i32_0 : i32, i32
  }
  func.func @transform_5(%arg0: i32) -> (i32, i32) {
    %c0_i32 = arith.constant 0 : i32
    %c0_i32_0 = arith.constant 0 : i32
    %c0_i32_1 = arith.constant 0 : i32
    return %c0_i32, %c0_i32_0 : i32, i32
  }
  func.func @transform_6(%arg0: i32) -> (i32, i32) {
    %c0_i32 = arith.constant 0 : i32
    %c0_i32_0 = arith.constant 0 : i32
    %c0_i32_1 = arith.constant 0 : i32
    return %c0_i32, %c0_i32_0 : i32, i32
  }
  func.func @transform_7(%arg0: i32) -> (i32, i32) {
    %c0_i32 = arith.constant 0 : i32
    %c0_i32_0 = arith.constant 0 : i32
    %c0_i32_1 = arith.constant 0 : i32
    return %c0_i32, %c0_i32_0 : i32, i32
  }
  func.func @transform_8(%arg0: i32) -> (i32, i32) {
    %c0_i32 = arith.constant 0 : i32
    %c0_i32_0 = arith.constant 0 : i32
    %c0_i32_1 = arith.constant 0 : i32
    return %c0_i32, %c0_i32_0 : i32, i32
  }
  func.func @transform_9(%arg0: i32) -> (i32, i32) {
    %c0_i32 = arith.constant 0 : i32
    %c0_i32_0 = arith.constant 0 : i32
    return %arg0, %c0_i32 : i32, i32
  }
}

</mosaic_0001>

<bundles_post_ra>
// kernel: tpu_custom_call.1
= control target key start
LH: loop header
LB: loop body
LE: loop exit
PB: predicated region body
PF: predicated region fallthrough
CT: control target
= control target key end

     0   :  { %14 = vsyncpa [#allocation3], 0  ;;  %s1207_s0 = inlined_call_operand.vmem [shape: f32[64,64], index: 0, kind: input, shape index: {}]   ;;  %s1208_s1 = inlined_call_operand.vmem [shape: bf16[64,32], index: 1, kind: input, shape index: {}]   ;;  %s1209_s2 = inlined_call_operand.vmem [shape: f32[1,32], index: 2, kind: input, shape index: {}]   ;;  %s1210_s3 = inlined_call_operand.vmem [shape: bf16[32,16], index: 3, kind: input, shape index: {}]   ;;  %s1211_s4 = inlined_call_operand.vmem [shape: f32[1,16], index: 4, kind: input, shape index: {}]   ;;  %s1212_s5 = inlined_call_operand.vmem [shape: bf16[16,8], index: 5, kind: input, shape index: {}]   ;;  %s1213_s6 = inlined_call_operand.vmem [shape: f32[1,8], index: 6, kind: input, shape index: {}]   ;;  %s1214_s7 = inlined_call_operand.vmem [shape: bf16[8,128], index: 7, kind: input, shape index: {}]   ;;  %s1215_s8 = inlined_call_operand.vmem [shape: f32[1,128], index: 8, kind: input, shape index: {}]   ;;  %s1216_s9 = inlined_call_operand.hbm [shape: bf16[64,128], index: 9, kind: output, shape index: {}]  }
   0x1   :  { %16 = vsyncpa [#allocation3 + $0x1], 0  ;;  %s1069_s30 = smov 0   ;;  %s1071_s10 = smov 0  }
   0x2   :  { %s1073_s11 = smov 0   ;;  %s1075_s12 = smov 0  }
   0x3 LB: > { %s1090_s13 = sadd.s32 4294967295, %s1014_s12   ;;  %s788_s14 = sadd.s32 4294967294, %s1014_s12   ;;  %s1014_s12 = sphi %s1075_s12, %s1222_s12   ;;  %s1010_s11 = sphi %s1073_s11, %s1221_s11   ;;  %s1006_s10 = sphi %s1071_s10, %s1220_s10   ;;  %s1002_s30 = sphi %s1069_s30, %s1219_s30  }
   0x4   : > { %s1094_s15 = sadd.s32 1, %s1014_s12   ;;  %s223_s16 = sadd.s32 1, %s1010_s11 }
   0x5   : > { %s220_s17 = ssub.s32 %s1014_s12, %s1094_s15  ;;  %p233_p0 = scmp.ne.s32.totalorder %s1010_s11, %s1006_s10 }
   0x6   : > { %p221_p1 = scmp.eq.s32.totalorder %s220_s17, 0  ;;  %p234_p2 = scmp.eq.s32.totalorder %s1090_s13, 1 }
   0x7   : > { %p239_p3 = scmp.ne.s32.totalorder %s1006_s10, %s1002_s30  ;;  %p240_p4 = scmp.eq.s32.totalorder %s788_s14, 1 }
   0x8   : > { %s1105_s18 = scalar_select %p221_p1, %s1010_s11, %s223_s16  }
   0x9   : > { %p1107_p5 = por %p234_p2, %p233_p0  ;;  %p1111_p6 = por %p240_p4, %p239_p3 }
   0xa   : > { %p791_p7 = scmp.ge.s32.totalorder %s1014_s12, 1  ;;  %p291_p8 = scmp.lt.s32.totalorder %s1014_s12, 3 }
   0xc   : > { %p292_p9 = pnand %p791_p7, %p291_p8 }
   0xd   : > { %v929_v0 = vld [vmem:[%s1208_s1] sm:$0xff] (!%p292_p9)   ;;  %s793_s23 = sshll.u32 (!%p292_p9), %s1090_s13, 2  ;;  %v930_v1 = vld [vmem:[%s1208_s1 + $0x8] sm:$0xff] (!%p292_p9)   ;;  %v931_v2 = vld [vmem:[%s1208_s1 + $0x10] sm:$0xff] (!%p292_p9)   ;;  %vm380_vm0 = vcmask (!%p292_p9), 523264   ;;  %vm465_vm1 = vcmask (!%p292_p9), 261120  }
   0xe   : > { %295 = sbr.rel (%p292_p9) target bundleno = 958 (0x3be), region = 56  ;;  %p328_p10 = scmp.lt.s32.totalorder (!%p292_p9), %s793_s23, 7  ;;  %855 = vmatprep.subr.bf16.mxu0 (!%p292_p9), %v929_v0  ;;  %v932_v5 = vld [vmem:[%s1208_s1 + $0x18] sm:$0xff] (!%p292_p9)   ;;  %v933_v10 = vld [vmem:[%s1210_s3] sm:$0xff] (!%p292_p9)   ;;  %v934_v11 = vld [vmem:[%s1210_s3 + $0x8] sm:$0xff] (!%p292_p9)   ;;  %vm542_vm2 = vcmask (!%p292_p9), 130048  }
   0xf   : > { %856 = vmatpush3.bf16.msra.mxu0 (!%p292_p9), %v929_v0  ;;  %867 = vmatprep.subr.bf16.mxu1 (!%p292_p9), %v933_v10  ;;  %v795_v12 = vld [vmem:[%s1209_s2] ss:$0 sm:$0xff] (!%p292_p9)  ;;  %vm619_vm3 = vcmask (!%p292_p9), 1043456   ;;  %vm612_vm4 = vcmask (!%p292_p9), 64512   ;;  %s324_s26 = sand.u32 (!%p292_p9), 1, %s1006_s10  }
  0x10   : > { %857 = vmatprep.subr.bf16.mxu0 (!%p292_p9), %v930_v1  ;;  %868 = vmatpush3.bf16.msra.mxu1 (!%p292_p9), %v933_v10  ;;  %v935_v27 = vld [vmem:[%s1212_s5] sm:$0xff] (!%p292_p9)   ;;  %s792_s27 = sshll.u32 (!%p292_p9), %s324_s26, 4 }
  0x11   : > { %869 = vmatprep.subr.bf16.mxu1 (!%p292_p9), %v934_v11  ;;  %v802_v28 = vld [vmem:[%s1211_s4] ss:$0 sm:$0xff] (!%p292_p9)  ;;  %s326_s29 = scalar_lea.vmem (!%p292_p9), [#allocation2], %s792_s27 }
  0x12   : > { %v602_v43 = vld [vmem:[%s1214_s7] sm:$0xf] (!%p292_p9)  ;;  %s726_s14 = sshll.u32 (!%p292_p9), %s326_s29, 4  ;;  %s1164_s14 = int_to_ptr.vmem [resolvable:$true] %s726_s14 }
  0x13   : > { %858 = vmatpush3.bf16.msra.mxu0 (!%p292_p9), %v930_v1  ;;  %v621_v44 = vsel (!%p292_p9), %vm619_vm3, %v602_v43, 0  ;;  %v807_v45 = vld [vmem:[%s1213_s6] ss:$0 sm:$0xff] (!%p292_p9)  ;;  %s952_s22 = scalar_lea.vmem (!%p292_p9), %s1164_s14, 256 }
  0x14   : > { %859 = vmatprep.subr.bf16.mxu0 (!%p292_p9), %v931_v2  ;;  %870 = vmatpush3.bf16.msra.mxu1 (!%p292_p9), %v934_v11  ;;  %v811_v60 = vld [vmem:[%s1215_s8] ss:$0 sm:$0xff] (!%p292_p9)  ;;  %p953_p11 = scmp.ne.s32.totalorder (!%p292_p9), %s1164_s14, %s952_s22 }
  0x15   : > { %s1224_s23 = smov (!%p328_p10, %s793_s23), 7  ;;  %875 = vmatprep.subr.bf16.mxu1 %v935_v27 }
  0x16   : > { %s794_s28 = sshll.u32 %s1224_s23, 3  ;;  %p954_p12 = pnand %p953_p11, %p1107_p5 }
  0x17   : > { %s331_s16 = scalar_lea.vmem %s1207_s0, %s794_s28  ;;  %860 = vmatpush3.bf16.msra.mxu0 %v931_v2  ;;  %s827_s28 = sshll.u32 %s1090_s13, 8 }
  0x18   : > { %v335_v3 = vld [vmem:[%s331_s16] sm:$0xff]  ;;  %v336_v4 = vld [vmem:[%s331_s16 + $0x8] sm:$0xff]  ;;  %v337_v7 = vld [vmem:[%s331_s16 + $0x10] sm:$0xff]  ;;  %861 = vmatprep.subr.bf16.mxu0 %v932_v5  ;;  %s1162_s21 = scalar_lea.hbm %s1216_s9, %s827_s28  ;;  %s1166_s13 = scalar_lea.sflag [#allocation3], %s324_s26 }
  0x19   : > { %v348_v6 = vpack.c.bf16 %v336_v4, %v335_v3  ;;  %v338_v8 = vld [vmem:[%s331_s16 + $0x18] sm:$0xff]  ;;  %p955_p13 = pneg %p954_p12  ;;  %s1016_s23 = smov [#allocation2]  }
  0x1a   : > { %v349_v9 = vpack.c.bf16 %v338_v8, %v337_v7  ;;  %s956_s24 = sshll.u32 %s1016_s23, 4  ;;  %s957_s24 = int_to_ptr.vmem [resolvable:$false] %s956_s24 }
  0x1b   : > { %863 = vmatprep.mubr.msk.bf16.mxu0 %vm380_vm0, %v348_v6  ;;  %862 = vmatpush3.bf16.msra.mxu0 %v932_v5  ;;  %s958_s25 = scalar_lea.vmem %s957_s24, 512  ;;  %p959_p0 = scmp.lt.s32.totalorder %s1164_s14, %s957_s24 }
  0x1c   : > { %887 = vmatprep.subr.msk.bf16.mxu0 %vm619_vm3, %v602_v43  ;;  %p960_p1 = scmp.lt.s32.totalorder %s958_s25, %s952_s22 }
  0x1e   : > { %864 = vmatmul.mubr.msk.bf16.vlgmr.msra.gmra.mrb[0].mxu0 %vm380_vm0, %v349_v9  ;;  %p961_p2 = por %p960_p1, %p959_p0 }
  0x1f   : > { %882 = vmatpush3.bf16.msra.mxu0 %v621_v44 }
  0x20   : > { %p962_p3 = pnand %p961_p2, %p955_p13 }
  0xf1   : > { %v865_v13 = vpop.f32.mrb[0].mxu0 }
  0xf2   : > { %v430_v14 = vadd.f32 %v865_v13, %v795_v12  ;;  %v421_v15 = vpop.f32.mrb[1].mxu0 }
  0xf3   : > { %v422_v16 = vadd.f32 %v795_v12, %v421_v15  ;;  %v866_v17 = vpop.f32.mrb[2].mxu0 }
  0xf4   : > { %v433_v18 = vadd.f32 %v866_v17, %v795_v12  ;;  %v424_v19 = vpop.f32.mrb[3].mxu0  ;;  %v438_v21 = vmax.f32 %v430_v14, 0.0 }
  0xf5   : > { %v425_v20 = vadd.f32 %v795_v12, %v424_v19  ;;  %v436_v23 = vmax.f32 %v422_v16, 0.0 }
  0xf6   : > { %v439_v22 = vmax.f32 %v433_v18, 0.0 }
  0xf7   : > { %v437_v24 = vmax.f32 %v425_v20, 0.0 }
  0xf8   : > { %v446_v25 = vpack.c.bf16 %v439_v22, %v438_v21 }
  0xf9   : > { %v445_v26 = vpack.c.bf16 %v437_v24, %v436_v23 }
  0xfb   : > { %871 = vmatprep.mubr.msk.bf16.mxu1 %vm465_vm1, %v445_v26 }
  0xfc   : > { %872 = vmatmul.mubr.msk.bf16.vlgmr.msra.gmra.mrb[0].mxu1 %vm465_vm1, %v446_v25 }
  0xfd   : > { %876 = vmatpush3.bf16.msra.mxu1 %v935_v27 }
 0x1cf   : > { %v873_v29 = vpop.f32.mrb[0].mxu1 }
 0x1d0   : > { %v515_v30 = vadd.f32 %v873_v29, %v802_v28  ;;  %v506_v31 = vpop.f32.mrb[1].mxu1 }
 0x1d1   : > { %v507_v32 = vadd.f32 %v802_v28, %v506_v31  ;;  %v874_v33 = vpop.f32.mrb[2].mxu1 }
 0x1d2   : > { %v518_v34 = vadd.f32 %v874_v33, %v802_v28  ;;  %v509_v35 = vpop.f32.mrb[3].mxu1  ;;  %v523_v37 = vmax.f32 %v515_v30, 0.0 }
 0x1d3   : > { %v510_v36 = vadd.f32 %v802_v28, %v509_v35  ;;  %v521_v39 = vmax.f32 %v507_v32, 0.0 }
 0x1d4   : > { %v524_v38 = vmax.f32 %v518_v34, 0.0 }
 0x1d5   : > { %v522_v40 = vmax.f32 %v510_v36, 0.0 }
 0x1d6   : > { %v529_v41 = vpack.c.bf16 %v524_v38, %v523_v37 }
 0x1d7   : > { %v528_v42 = vpack.c.bf16 %v522_v40, %v521_v39 }
 0x1d9   : > { %877 = vmatprep.mubr.msk.bf16.mxu1 %vm542_vm2, %v528_v42 }
 0x1da   : > { %878 = vmatmul.mubr.msk.bf16.vlgmr.msra.gmra.mrb[4].mxu1 %vm542_vm2, %v529_v41 }
 0x2ad   : > { %v879_v46 = vpop.f32.mrb[4].mxu1 }
 0x2ae   : > { %v592_v47 = vadd.f32 %v879_v46, %v807_v45  ;;  %v583_v48 = vpop.f32.mrb[5].mxu1 }
 0x2af   : > { %v584_v49 = vadd.f32 %v807_v45, %v583_v48  ;;  %v880_v50 = vpop.f32.mrb[6].mxu1 }
 0x2b0   : > { %v595_v51 = vadd.f32 %v880_v50, %v807_v45  ;;  %v586_v52 = vpop.f32.mrb[7].mxu1  ;;  %v600_v54 = vmax.f32 %v592_v47, 0.0 }
 0x2b1   : > { %v587_v53 = vadd.f32 %v807_v45, %v586_v52  ;;  %v598_v56 = vmax.f32 %v584_v49, 0.0 }
 0x2b2   : > { %v601_v55 = vmax.f32 %v595_v51, 0.0 }
 0x2b3   : > { %v599_v57 = vmax.f32 %v587_v53, 0.0 }
 0x2b4   : > { %v605_v58 = vpack.c.bf16 %v601_v55, %v600_v54 }
 0x2b5   : > { %v604_v59 = vpack.c.bf16 %v599_v57, %v598_v56 }
 0x2b7   : > { %883 = vmatprep.mubr.msk.bf16.mxu0 %vm612_vm4, %v604_v59 }
 0x2b8   : > { %884 = vmatmul.mubr.msk.bf16.vlgmr.msra.gmra.mrb[4].mxu0 %vm612_vm4, %v605_v58 }
 0x38b   : > { %v885_v61 = vpop.f32.mrb[4].mxu0 }
 0x38c   : > { %v666_v62 = vadd.f32 %v885_v61, %v811_v60  ;;  %v657_v63 = vpop.f32.mrb[5].mxu0 }
 0x38d   : > { %v658_v0 = vadd.f32 %v811_v60, %v657_v63  ;;  %v886_v1 = vpop.f32.mrb[6].mxu0 }
 0x38e   : > { %v674_v2 = vsub.f32 0.0, %v666_v62  ;;  %v669_v3 = vadd.f32 %v886_v1, %v811_v60  ;;  %v660_v4 = vpop.f32.mrb[7].mxu0 }
 0x38f   : > { %v672_v5 = vsub.f32 0.0, %v658_v0  ;;  %v661_v6 = vadd.f32 %v811_v60, %v660_v4 }
 0x390   : > { %v680_v7 = vmul.f32 1.442695, %v674_v2  ;;  %v675_v8 = vsub.f32 0.0, %v669_v3 }
 0x391   : > { %v676_v9 = vmul.f32 1.442695, %v672_v5  ;;  %v673_v10 = vsub.f32 0.0, %v661_v6 }
 0x392   : > { %936 = vpow2.f32 %v680_v7  ;;  %v682_v11 = vmul.f32 1.442695, %v675_v8 }
 0x393   : > { %938 = vpow2.f32 %v676_v9  ;;  %v678_v12 = vmul.f32 1.442695, %v673_v10 }
 0x394   : > { %940 = vpow2.f32 %v682_v11 }
 0x395   : > { %942 = vpow2.f32 %v678_v12 }
 0x39c   : > { %v937_v13 = vpop.eup %936 }
 0x39d   : > { %v939_v14 = vpop.eup %938  ;;  %v686_v15 = vadd.f32 1.0, %v937_v13 }
 0x39e   : > { %v941_v16 = vpop.eup %940  ;;  %v684_v17 = vadd.f32 1.0, %v939_v14 }
 0x39f   : > { %v943_v18 = vpop.eup %942  ;;  %944 = vrcp.f32 %v686_v15  ;;  %v687_v19 = vadd.f32 1.0, %v941_v16 }
 0x3a0   : > { %946 = vrcp.f32 %v684_v17  ;;  %v685_v20 = vadd.f32 1.0, %v943_v18 }
 0x3a1   : > { %948 = vrcp.f32 %v687_v19 }
 0x3a2   : > { %950 = vrcp.f32 %v685_v20 }
 0x3a9   : > { %v945_v21 = vpop.eup %944 }
 0x3aa   : > { %v947_v22 = vpop.eup %946 }
 0x3ab   : > { %v949_v23 = vpop.eup %948 }
 0x3ac   : > { %v951_v24 = vpop.eup %950  ;;  %v836_v25 = vpack.c.bf16 %v949_v23, %v945_v21 }
 0x3ad   : > { %v831_v26 = vpack.c.bf16 %v951_v24, %v947_v22 }
 0x3ae   : > { %838 = vst [vmem:[%s326_s29 + $0x8] sm:$0xff] %v836_v25  }
 0x3af   : > { %832 = vst [vmem:[%s326_s29] sm:$0xff] %v831_v26  }
 0x3b0   : > { %965 = shalt.err (!%p962_p3)
}
 0x3b1   : > { %s966_s26 = scalar_lea.hbm %s1162_s21, 256  ;;  %s970_s29 = scalar_lea.hbm %s1216_s9, 512 }
 0x3b2   : > { %p967_p4 = scmp.ne.s32.totalorder %s1162_s21, %s966_s26  ;;  %p971_p9 = scmp.lt.u32.totalorder %s1162_s21, %s1216_s9 }
 0x3b3   : > { %p972_p10 = scmp.lt.u32.totalorder %s970_s29, %s966_s26  ;;  %p974_p12 = scmp.lt.u32.totalorder %s966_s26, %s1162_s21 }
 0x3b4   : > { %p968_p7 = pnand %p967_p4, %p1107_p5 }
 0x3b5   : > { %p973_p11 = por %p972_p10, %p971_p9 }
 0x3b6   : > { %p969_p8 = pneg %p968_p7 }
 0x3b7   : > { %p975_p13 = por %p974_p12, %p973_p11 }
 0x3b9   : > { %p976_p0 = pnand %p975_p13, %p969_p8 }
 0x3bb   : > { %979 = shalt.err (!%p976_p0)
}
 0x3bc   : > { %s1017_s22 = smov 64   ;;  %s1018_s23 = smov 4  }
 0x3bd   : > { %888 = dma.vmem_to_hbm [thread:$0]  (%p1107_p5), %s1164_s14, 256, %s1162_s21, %s1166_s13, %s1017_s22, %s1017_s22, %s1018_s23  }
 0x3be PF: > { %p894_p1 = scmp.ge.s32.totalorder %s1014_s12, 2  ;;  %s741_s24 = sand.u32 1, %s1002_s30  }
 0x3bf   : > { %s742_s25 = scalar_lea.sflag [#allocation3], %s741_s24 }
 0x3c0   : > { %p891_p2 = pnand %p894_p1, %p1111_p6 }
 0x3c2   : > { %997 = dma.done.wait (!%p891_p2), %s742_s25, 256  }
 0x3c3   : > { %999 = vsyncadd (!%p891_p2), %s742_s25, 4294967040  ;;  %p19_p3 = scmp.ge.s32.totalorder %s1094_s15, 4   ;;  %s1219_s30 = smov %s1006_s10 }
 0x3c4   : > { %s1220_s10 = smov %s1010_s11  ;;  %s1221_s11 = smov %s1105_s18 }
 0x3c5   : > { %s1222_s12 = smov %s1094_s15  ;;  %21 = sbr.rel (!%p19_p3) target bundleno = 3 (0x3), region = 91 }
 0x3cc   :  { %747 = vsyncpa [#allocation3], 1 }
 0x3cd   :  { %749 = vsyncpa [#allocation3 + $0x1], 1 }

</bundles_post_ra>
